<compile_context>
chip_gen: v6e
topology: v6e:2x2x1
jax: 0.10.0
libtpu: 0.0.40
codegen_flags: <defaults>
</compile_context>

<pallas_src>
import functools
import math

import jax
import jax.numpy as jnp
from jax.experimental import pallas as pl
from jax.experimental.pallas import tpu as pltpu


def _planar_compose_kernel(x_ref, w_ref, u_ref, s_ref, wu_ref, z_ref, ld_ref,
                           *, num_flows):
    b = pl.program_id(0)               # batch index (obs term depends only on batch)
    x = x_ref[0]                       # (D, TN)  particles on the lane axis
    ld = jnp.zeros((1, x.shape[1]), jnp.float32)

    for i in range(num_flows):         # k is small -> static unroll
        w = w_ref[i]                   # (D, 1)
        u = u_ref[i]                   # (D, 1)
        s = s_ref[i, b]                # scalar: obs·(b@wl) + b·bl  (SMEM)
        wu = wu_ref[i, 0]              # scalar: w·u                (SMEM)

        lin = jnp.sum(x * w, axis=0, keepdims=True) + s      # (1, TN)
        t = jnp.tanh(lin)
        x = x + u * t                                         # (D, TN)
        one_m_t2 = 1.0 - t * t
        ld = ld + jnp.log(jnp.abs(1.0 + one_m_t2 * wu) + 1e-4)

    z_ref[0] = x
    ld_ref[0] = ld


def _lane_tile(n):
    """Particle-axis lane tile: multiple of 128 dividing n, else full extent."""
    if n % 128 != 0:
        return n
    for t in (2048, 1024, 512, 256, 128):
        if n % t == 0:
            return t
    return n


@functools.partial(jax.jit, static_argnums=(2,))
def planar_compose_forward(proposal_samples, observations, time, params):
    """proposal_samples: (B, N, D); observations: (T, B, D); time: int."""
    B, N, D = proposal_samples.shape
    w, u, b, wl, bl = params
    k = w.shape[0]

    obs_t = observations[time].astype(jnp.float32)                # (B, D)

    # Fold nn.Linear: sum(b*(obs@wl.T+bl), -1) = obs·(b@wl) + b·bl
    bw = b[:, 0, :]                                               # (k, D)
    v = jnp.einsum('kj,kji->ki', bw, wl.astype(jnp.float32))      # (k, D)
    c = jnp.sum(bw * bl[:, 0, :], axis=-1)                        # (k,)
    s_tab = (v @ obs_t.T + c[:, None]).astype(jnp.float32)        # (k, B)
    wu_tab = jnp.sum(w[:, 0, :] * u[:, 0, :], axis=-1,
                     keepdims=True).astype(jnp.float32)           # (k, 1)

    w_col = jnp.transpose(w, (0, 2, 1)).astype(jnp.float32)       # (k, D, 1)
    u_col = jnp.transpose(u, (0, 2, 1)).astype(jnp.float32)       # (k, D, 1)

    # Lane-major working layout: (B, D, N)
    x_t = jnp.transpose(proposal_samples.astype(jnp.float32), (0, 2, 1))

    tn = _lane_tile(N)
    grid = (B, N // tn)

    kernel = functools.partial(_planar_compose_kernel, num_flows=k)
    z_t, ld3 = pl.pallas_call(
        kernel,
        grid=grid,
        in_specs=[
            pl.BlockSpec((1, D, tn), lambda bi, ni: (bi, 0, ni)),          # x tile
            pl.BlockSpec((k, D, 1), lambda bi, ni: (0, 0, 0)),             # w columns
            pl.BlockSpec((k, D, 1), lambda bi, ni: (0, 0, 0)),             # u columns
            pl.BlockSpec(memory_space=pltpu.MemorySpace.SMEM),             # s table (k,B)
            pl.BlockSpec(memory_space=pltpu.MemorySpace.SMEM),             # w·u (k,1)
        ],
        out_specs=(
            pl.BlockSpec((1, D, tn), lambda bi, ni: (bi, 0, ni)),          # z tile
            pl.BlockSpec((1, 1, tn), lambda bi, ni: (bi, 0, ni)),          # log_det tile
        ),
        out_shape=(
            jax.ShapeDtypeStruct((B, D, N), jnp.float32),
            jax.ShapeDtypeStruct((B, 1, N), jnp.float32),
        ),
        input_output_aliases={0: 0},   # z reuses the x buffer
        compiler_params=pltpu.CompilerParams(
            dimension_semantics=("parallel", "parallel")),
    )(x_t, w_col, u_col, s_tab, wu_tab)

    z = jnp.transpose(z_t, (0, 2, 1))          # (B, N, D)
    log_det = ld3[:, 0, :]                     # (B, N)
    return z, log_det


def init_params(key, k, dim):
    """Deterministic synthetic init mirroring reset_parameters / nn.Linear shapes."""
    bound = math.sqrt(1.0 / dim)
    ks = jax.random.split(key, 5)
    w = jax.random.uniform(ks[0], (k, 1, dim), jnp.float32, -bound, bound)
    u = jax.random.uniform(ks[1], (k, 1, dim), jnp.float32, -bound, bound)
    b = jax.random.uniform(ks[2], (k, 1, dim), jnp.float32, -bound, bound)
    wl = jax.random.uniform(ks[3], (k, dim, dim), jnp.float32, -bound, bound)  # Linear weight
    bl = jax.random.uniform(ks[4], (k, 1, dim), jnp.float32, -bound, bound)    # Linear bias
    return (w, u, b, wl, bl)


def reference_forward(x, observations, time, params):
    """Pure-JAX reference matching the PyTorch module."""
    w, u, b, wl, bl = params
    B, N, D = x.shape
    obs = jnp.broadcast_to(observations[time][:, None, :], (B, N, D))
    ld = jnp.zeros((B, N), jnp.float32)
    for i in range(w.shape[0]):
        wi, ui, bi = w[i, 0], u[i, 0], b[i, 0]
        obs_lin = obs @ wl[i].T + bl[i, 0]
        lin = (x @ wi)[..., None] + jnp.sum(bi * obs_lin, axis=-1, keepdims=True)
        t = jnp.tanh(lin)
        x = x + ui * t
        phi = (1.0 - t * t) * wi
        ld = ld + jnp.log(jnp.abs(1.0 + phi @ ui) + 1e-4)
    return x, ld


if __name__ == "__main__":
    key = jax.random.PRNGKey(0)
    k_flows, dim = 2, 4
    B, N, T = 2, 16, 8   # batch, particles, time steps
    time = 3

    k_x, k_obs, k_p = jax.random.split(key, 3)
    proposal_samples = jax.random.normal(k_x, (B, N, dim), jnp.float32)
    observations = jax.random.normal(k_obs, (T, B, dim), jnp.float32)
    params = init_params(k_p, k_flows, dim)

    z, log_det = planar_compose_forward(proposal_samples, observations, time, params)
    z = jax.block_until_ready(z)
    log_det = jax.block_until_ready(log_det)

    z_ref, ld_ref = reference_forward(proposal_samples, observations, time, params)
    assert jnp.allclose(z, z_ref, atol=1e-5, rtol=1e-5)
    assert jnp.allclose(log_det, ld_ref, atol=1e-5, rtol=1e-5)

    print("KERNEL_OK")
</pallas_src>

<mosaic_0001>
module attributes {stable_mosaic.version = 11 : i64} {
  func.func @_planar_compose_kernel(%arg0: i32, %arg1: i32, %arg2: memref<1x4x16xf32, #tpu.memory_space<vmem>>, %arg3: memref<2x4x1xf32, #tpu.memory_space<vmem>>, %arg4: memref<2x4x1xf32, #tpu.memory_space<vmem>>, %arg5: memref<2x2xf32, #tpu.memory_space<smem>>, %arg6: memref<2x1xf32, #tpu.memory_space<smem>>, %arg7: memref<1x4x16xf32, #tpu.memory_space<vmem>>, %arg8: memref<1x1x16xf32, #tpu.memory_space<vmem>>) attributes {dimension_semantics = [#tpu.dimension_semantics<parallel>, #tpu.dimension_semantics<parallel>], iteration_bounds = array<i64: 2, 1>, scalar_prefetch = 0 : i64, scratch_operands = 0 : i64, tpu.core_type = #tpu.core_type<tc>, window_params = [{transform_indices = @transform_0, window_bounds = array<i64: 1, 4, 16>}, {pipeline_mode = #tpu.pipeline_mode<synchronous>, transform_indices = @transform_1, window_bounds = array<i64: 2, 4, 1>}, {pipeline_mode = #tpu.pipeline_mode<synchronous>, transform_indices = @transform_2, window_bounds = array<i64: 2, 4, 1>}, {transform_indices = @transform_3, window_bounds = array<i64: 2, 2>}, {transform_indices = @transform_4, window_bounds = array<i64: 2, 1>}, {transform_indices = @transform_5, window_bounds = array<i64: 1, 4, 16>}, {transform_indices = @transform_6, window_bounds = array<i64: 1, 1, 16>}]} {
    %c0 = arith.constant 0 : index
    %c0_0 = arith.constant 0 : index
    %c0_1 = arith.constant 0 : index
    %0 = vector.load %arg2[%c0, %c0_0, %c0_1] : memref<1x4x16xf32, #tpu.memory_space<vmem>>, vector<1x4x16xf32>
    %1 = vector.shape_cast %0 : vector<1x4x16xf32> to vector<4x16xf32>
    %cst = arith.constant 0.000000e+00 : f32
    %2 = vector.broadcast %cst : f32 to vector<1x16xf32>
    %c0_2 = arith.constant 0 : index
    %c0_3 = arith.constant 0 : index
    %c0_4 = arith.constant 0 : index
    %3 = vector.load %arg3[%c0_2, %c0_3, %c0_4] : memref<2x4x1xf32, #tpu.memory_space<vmem>>, vector<1x4x1xf32>
    %4 = vector.shape_cast %3 : vector<1x4x1xf32> to vector<4x1xf32>
    %c0_5 = arith.constant 0 : index
    %c0_6 = arith.constant 0 : index
    %c0_7 = arith.constant 0 : index
    %5 = vector.load %arg4[%c0_5, %c0_6, %c0_7] : memref<2x4x1xf32, #tpu.memory_space<vmem>>, vector<1x4x1xf32>
    %6 = vector.shape_cast %5 : vector<1x4x1xf32> to vector<4x1xf32>
    %c0_8 = arith.constant 0 : index
    %7 = arith.index_cast %arg0 : i32 to index
    %8 = memref.load %arg5[%c0_8, %7] : memref<2x2xf32, #tpu.memory_space<smem>>
    %c0_9 = arith.constant 0 : index
    %c0_10 = arith.constant 0 : index
    %9 = memref.load %arg6[%c0_9, %c0_10] : memref<2x1xf32, #tpu.memory_space<smem>>
    %10 = vector.broadcast %4 : vector<4x1xf32> to vector<4x16xf32>
    %11 = arith.mulf %1, %10 : vector<4x16xf32>
    %cst_11 = arith.constant dense<0.000000e+00> : vector<16xf32>
    %12 = vector.multi_reduction <add>, %11, %cst_11 [0] : vector<4x16xf32> to vector<16xf32>
    %13 = vector.shape_cast %12 : vector<16xf32> to vector<1x16xf32>
    %14 = vector.broadcast %8 : f32 to vector<1x16xf32>
    %15 = arith.addf %13, %14 : vector<1x16xf32>
    %16 = math.tanh %15 : vector<1x16xf32>
    %17 = vector.broadcast %6 : vector<4x1xf32> to vector<4x16xf32>
    %18 = vector.broadcast %16 : vector<1x16xf32> to vector<4x16xf32>
    %19 = arith.mulf %17, %18 : vector<4x16xf32>
    %20 = arith.addf %1, %19 : vector<4x16xf32>
    %21 = arith.mulf %16, %16 : vector<1x16xf32>
    %cst_12 = arith.constant 1.000000e+00 : f32
    %22 = vector.broadcast %cst_12 : f32 to vector<1x16xf32>
    %23 = arith.subf %22, %21 : vector<1x16xf32>
    %24 = vector.broadcast %9 : f32 to vector<1x16xf32>
    %25 = arith.mulf %23, %24 : vector<1x16xf32>
    %cst_13 = arith.constant 1.000000e+00 : f32
    %26 = vector.broadcast %cst_13 : f32 to vector<1x16xf32>
    %27 = arith.addf %26, %25 : vector<1x16xf32>
    %28 = math.absf %27 : vector<1x16xf32>
    %cst_14 = arith.constant 9.99999974E-5 : f32
    %29 = vector.broadcast %cst_14 : f32 to vector<1x16xf32>
    %30 = arith.addf %28, %29 : vector<1x16xf32>
    %31 = math.log %30 : vector<1x16xf32>
    %32 = arith.addf %2, %31 : vector<1x16xf32>
    %c1 = arith.constant 1 : index
    %c0_15 = arith.constant 0 : index
    %c0_16 = arith.constant 0 : index
    %33 = vector.load %arg3[%c1, %c0_15, %c0_16] : memref<2x4x1xf32, #tpu.memory_space<vmem>>, vector<1x4x1xf32>
    %34 = vector.shape_cast %33 : vector<1x4x1xf32> to vector<4x1xf32>
    %c1_17 = arith.constant 1 : index
    %c0_18 = arith.constant 0 : index
    %c0_19 = arith.constant 0 : index
    %35 = vector.load %arg4[%c1_17, %c0_18, %c0_19] : memref<2x4x1xf32, #tpu.memory_space<vmem>>, vector<1x4x1xf32>
    %36 = vector.shape_cast %35 : vector<1x4x1xf32> to vector<4x1xf32>
    %c1_20 = arith.constant 1 : index
    %37 = arith.index_cast %arg0 : i32 to index
    %38 = memref.load %arg5[%c1_20, %37] : memref<2x2xf32, #tpu.memory_space<smem>>
    %c1_21 = arith.constant 1 : index
    %c0_22 = arith.constant 0 : index
    %39 = memref.load %arg6[%c1_21, %c0_22] : memref<2x1xf32, #tpu.memory_space<smem>>
    %40 = vector.broadcast %34 : vector<4x1xf32> to vector<4x16xf32>
    %41 = arith.mulf %20, %40 : vector<4x16xf32>
    %cst_23 = arith.constant dense<0.000000e+00> : vector<16xf32>
    %42 = vector.multi_reduction <add>, %41, %cst_23 [0] : vector<4x16xf32> to vector<16xf32>
    %43 = vector.shape_cast %42 : vector<16xf32> to vector<1x16xf32>
    %44 = vector.broadcast %38 : f32 to vector<1x16xf32>
    %45 = arith.addf %43, %44 : vector<1x16xf32>
    %46 = math.tanh %45 : vector<1x16xf32>
    %47 = vector.broadcast %36 : vector<4x1xf32> to vector<4x16xf32>
    %48 = vector.broadcast %46 : vector<1x16xf32> to vector<4x16xf32>
    %49 = arith.mulf %47, %48 : vector<4x16xf32>
    %50 = arith.addf %20, %49 : vector<4x16xf32>
    %51 = arith.mulf %46, %46 : vector<1x16xf32>
    %cst_24 = arith.constant 1.000000e+00 : f32
    %52 = vector.broadcast %cst_24 : f32 to vector<1x16xf32>
    %53 = arith.subf %52, %51 : vector<1x16xf32>
    %54 = vector.broadcast %39 : f32 to vector<1x16xf32>
    %55 = arith.mulf %53, %54 : vector<1x16xf32>
    %cst_25 = arith.constant 1.000000e+00 : f32
    %56 = vector.broadcast %cst_25 : f32 to vector<1x16xf32>
    %57 = arith.addf %56, %55 : vector<1x16xf32>
    %58 = math.absf %57 : vector<1x16xf32>
    %cst_26 = arith.constant 9.99999974E-5 : f32
    %59 = vector.broadcast %cst_26 : f32 to vector<1x16xf32>
    %60 = arith.addf %58, %59 : vector<1x16xf32>
    %61 = math.log %60 : vector<1x16xf32>
    %62 = arith.addf %32, %61 : vector<1x16xf32>
    %c0_27 = arith.constant 0 : index
    %c0_28 = arith.constant 0 : index
    %c0_29 = arith.constant 0 : index
    %63 = vector.load %arg7[%c0_27, %c0_28, %c0_29] : memref<1x4x16xf32, #tpu.memory_space<vmem>>, vector<1x4x16xf32>
    %64 = vector.shape_cast %63 : vector<1x4x16xf32> to vector<4x16xf32>
    %65 = vector.shape_cast %50 : vector<4x16xf32> to vector<1x4x16xf32>
    tpu.vector_store %arg7[%c0_27, %c0_28, %c0_29], %65 {strides = array<i32>} : memref<1x4x16xf32, #tpu.memory_space<vmem>>, vector<1x4x16xf32>,
    %c0_30 = arith.constant 0 : index
    %c0_31 = arith.constant 0 : index
    %c0_32 = arith.constant 0 : index
    %66 = vector.load %arg8[%c0_30, %c0_31, %c0_32] : memref<1x1x16xf32, #tpu.memory_space<vmem>>, vector<1x1x16xf32>
    %67 = vector.shape_cast %66 : vector<1x1x16xf32> to vector<1x16xf32>
    %68 = vector.shape_cast %62 : vector<1x16xf32> to vector<1x1x16xf32>
    tpu.vector_store %arg8[%c0_30, %c0_31, %c0_32], %68 {strides = array<i32>} : memref<1x1x16xf32, #tpu.memory_space<vmem>>, vector<1x1x16xf32>,
    return
  }
  func.func @transform_0(%arg0: i32, %arg1: i32) -> (i32, i32, i32) {
    %c0_i32 = arith.constant 0 : i32
    %c0_i32_0 = arith.constant 0 : i32
    return %arg0, %c0_i32, %arg1 : i32, i32, i32
  }
  func.func @transform_1(%arg0: i32, %arg1: i32) -> (i32, i32, i32) {
    %c0_i32 = arith.constant 0 : i32
    %c0_i32_0 = arith.constant 0 : i32
    %c0_i32_1 = arith.constant 0 : i32
    %c0_i32_2 = arith.constant 0 : i32
    return %c0_i32, %c0_i32_0, %c0_i32_1 : i32, i32, i32
  }
  func.func @transform_2(%arg0: i32, %arg1: i32) -> (i32, i32, i32) {
    %c0_i32 = arith.constant 0 : i32
    %c0_i32_0 = arith.constant 0 : i32
    %c0_i32_1 = arith.constant 0 : i32
    %c0_i32_2 = arith.constant 0 : i32
    return %c0_i32, %c0_i32_0, %c0_i32_1 : i32, i32, i32
  }
  func.func @transform_3(%arg0: i32, %arg1: i32) -> (i32, i32) {
    %c0_i32 = arith.constant 0 : i32
    %c0_i32_0 = arith.constant 0 : i32
    %c0_i32_1 = arith.constant 0 : i32
    return %c0_i32, %c0_i32_0 : i32, i32
  }
  func.func @transform_4(%arg0: i32, %arg1: i32) -> (i32, i32) {
    %c0_i32 = arith.constant 0 : i32
    %c0_i32_0 = arith.constant 0 : i32
    %c0_i32_1 = arith.constant 0 : i32
    return %c0_i32, %c0_i32_0 : i32, i32
  }
  func.func @transform_5(%arg0: i32, %arg1: i32) -> (i32, i32, i32) {
    %c0_i32 = arith.constant 0 : i32
    %c0_i32_0 = arith.constant 0 : i32
    return %arg0, %c0_i32, %arg1 : i32, i32, i32
  }
  func.func @transform_6(%arg0: i32, %arg1: i32) -> (i32, i32, i32) {
    %c0_i32 = arith.constant 0 : i32
    %c0_i32_0 = arith.constant 0 : i32
    return %arg0, %c0_i32, %arg1 : i32, i32, i32
  }
}

</mosaic_0001>

<bundles_post_ra>
// kernel: planar_compose_forward.1
= control target key start
LH: loop header
LB: loop body
LE: loop exit
PB: predicated region body
PF: predicated region fallthrough
CT: control target
= control target key end

     0   :  { %12 = vsyncpa [#allocation4], 0  ;;  %s976_s0 = inlined_call_operand.vmem [shape: f32[2,4,16], index: 0, kind: input, shape index: {}, may-alias: {0,5}]   ;;  %s977_s1 = inlined_call_operand.vmem [shape: f32[2,4,1], index: 1, kind: input, shape index: {}]   ;;  %s978_s2 = inlined_call_operand.vmem [shape: f32[2,4,1], index: 2, kind: input, shape index: {}]   ;;  %s979_s3 = inlined_call_operand.vmem [shape: f32[2,2], index: 3, kind: input, shape index: {}]   ;;  %s980_s4 = inlined_call_operand.vmem [shape: f32[2,1], index: 4, kind: input, shape index: {}]   ;;  %s981_s5 = inlined_call_operand.vmem [shape: f32[2,4,16], index: 5, kind: output, shape index: {0}, may-alias: {0,5}]   ;;  %s982_s6 = inlined_call_operand.hbm [shape: f32[2,1,16], index: 6, kind: output, shape index: {1}]  }
   0x1   :  { %13 = vsyncpa [#allocation6], 0 }
   0x2   :  { %14 = vsyncpa [#allocation3], 0 }
   0x3   :  { %16 = vsyncpa [#allocation3 + $0x1], 0  ;;  %s811_s21 = smov 0   ;;  %s813_s22 = smov 0  }
   0x4   :  { %s815_s23 = smov 0   ;;  %s817_s24 = smov 0  }
   0x5   :  { %s819_s25 = smov 0   ;;  %s821_s26 = smov 0  }
   0x6 LB: > { %s549_s27 = sadd.s32 4294967295, %s770_s26   ;;  %s550_s28 = sadd.s32 4294967294, %s770_s26   ;;  %s770_s26 = sphi %s821_s26, %s22_s26   ;;  %s766_s25 = sphi %s819_s25, %s1000_s25   ;;  %s762_s24 = sphi %s817_s24, %s999_s24   ;;  %s758_s23 = sphi %s815_s23, %s998_s23   ;;  %s754_s22 = sphi %s813_s22, %s997_s22   ;;  %s750_s21 = sphi %s811_s21, %s996_s21  }
   0x7   : > { %s34_s29 = sadd.s32 1, %s766_s25  ;;  %s183_s30 = sadd.s32 1, %s758_s23 }
   0x8   : > { %p36_p0 = scmp.ge.s32.totalorder %s34_s29, 2  ;;  %p193_p1 = scmp.ne.s32.totalorder %s758_s23, %s754_s22 }
   0x9   : > { %p194_p2 = scmp.eq.s32.totalorder %s549_s27, 1  ;;  %p199_p3 = scmp.ne.s32.totalorder %s754_s22, %s750_s21 }
   0xa   : > { %s1002_s29 = smov (%p36_p0, %s34_s29), 0  ;;  %p200_p5 = scmp.eq.s32.totalorder %s550_s28, 1 }
   0xb   : > { %p851_p4 = por %p194_p2, %p193_p1  ;;  %s178_s8 = ssub.s32 %s766_s25, %s1002_s29 }
   0xc   : > { %p551_p6 = scmp.ge.s32.totalorder %s770_s26, 1  ;;  %p181_p7 = scmp.eq.s32.totalorder %s178_s8, 0 }
   0xd   : > { %s987_s7 = scalar_select %p851_p4, 1, 0 }
   0xe   : > { %p858_p8 = por %p200_p5, %p199_p3  ;;  %p207_p9 = scmp.lt.s32.totalorder %s770_s26, 3 }
   0xf   : > { %s864_s10 = scalar_select %p181_p7, %s758_s23, %s183_s30  }
  0x10   : > { %s988_s9 = scalar_select %p858_p8, 1, 0 }
  0x11   : > { %p866_p10 = pnand %p551_p6, %p207_p9  ;;  %p870_p11 = scmp.eq.s32.totalorder %s549_s27, 0 }
  0x12   : > { %s226_s15 = sshll.u32 %s979_s3, 4  ;;  %s237_s18 = sshll.u32 %s980_s4, 4  ;;  %s227_s15 = int_to_ptr.vmem [resolvable:$true] %s226_s15  ;;  %s238_s18 = int_to_ptr.vmem [resolvable:$true] %s237_s18 }
  0x13   : > { %s989_s11 = scalar_select %p866_p10, 1, 0 }
  0x14   : > { %s990_s12 = scalar_select %p870_p11, 1, 0 }
  0x15   : > { %p579_p12 = pneg %p866_p10  ;;  %s656_s20 = scalar_lea.vmem %s227_s15, 32 }
  0x16   : > { %p657_p0 = scmp.ne.s32.totalorder %s227_s15, %s656_s20  ;;  %p664_p5 = scmp.lt.s32.totalorder %s227_s15, %s227_s15 }
  0x17   : > { %p884_p13 = pnand %p870_p11, %p579_p12  ;;  %p665_p6 = scmp.lt.s32.totalorder %s656_s20, %s656_s20 }
  0x19   : > { %p658_p1 = pneg %p884_p13  ;;  %p666_p7 = por %p665_p6, %p664_p5 }
  0x1b   : > { %p659_p2 = pnand %p658_p1, %p657_p0 }
  0x1d   : > { %p660_p3 = pneg %p659_p2 }
  0x1f   : > { %p667_p9 = pnand %p666_p7, %p660_p3 }
  0x21   : > { %670 = shalt.err (!%p667_p9)
}
  0x22   : > { %s772_s27 = smov [#allocation2]   ;;  %s671_s28 = scalar_lea.vmem %s238_s18, 32 }
  0x23   : > { %582 = dma.vmem_to_smem (!%p884_p13), %s227_s15, 32, %s772_s27, [#allocation4]  }
  0x24   : > { %p672_p12 = scmp.ne.s32.totalorder %s238_s18, %s671_s28  ;;  %p679_p11 = scmp.lt.s32.totalorder %s238_s18, %s238_s18 }
  0x25   : > { %p680_p10 = scmp.lt.s32.totalorder %s671_s28, %s671_s28 }
  0x26   : > { %p674_p8 = pnand %p672_p12, %p658_p1 }
  0x27   : > { %p681_p0 = por %p680_p10, %p679_p11 }
  0x28   : > { %p675_p4 = pneg %p674_p8 }
  0x2a   : > { %p682_p2 = pnand %p681_p0, %p675_p4 }
  0x2c   : > { %685 = shalt.err (!%p682_p2)
}
  0x2d   : > { %s773_s30 = smov [#allocation5]   ;;  %p992_p3 = scmp.ne.s32.totalorder %s989_s11, 0 }
  0x2e   : > { %585 = dma.vmem_to_smem (!%p884_p13), %s238_s18, 32, %s773_s30, [#allocation6]  }
  0x2f   : > { %260 = sbr.rel (%p992_p3) target bundleno = 292 (0x124), region = 40  ;;  %p993_p5 = scmp.ne.s32.totalorder (!%p992_p3), %s990_s12, 0 }
  0x34   : > { %737 = dma.done.wait (%p993_p5), [#allocation4], 32  }
  0x35   : > { %739 = vsyncadd (%p993_p5), [#allocation4], 4294967264 }
  0x36   : > { %741 = dma.done.wait (%p993_p5), [#allocation6], 32  }
  0x37   : > { %743 = vsyncadd (%p993_p5), [#allocation6], 4294967264 }
  0x38   : > { %270 = sfence }
  0x39   : > { %v318_v0 = vld [vmem:[%s977_s1] sm:$0xf]  ;;  %v774_v1 = vmov 0   ;;  %v560_v2 = vld [vmem:[%s977_s1 + $0x4] sm:$0xf]  ;;  %p303_p4 = scmp.lt.s32.totalorder %s762_s24, 1 }
  0x3a   : > { %646 = vset.pattern.permute.xlu0 %v774_v1  ;;  %647 = vset.pattern.permute.xlu1 %v774_v1  ;;  %v319_v3 = vld [vmem:[%s978_s2] sm:$0xf]  ;;  %v561_v4 = vld [vmem:[%s978_s2 + $0x4] sm:$0xf]  ;;  %vm328_vm0 = vcmask 125952   ;;  %s320_s30 = sld [smem:[#allocation2 + %s762_s24]] }
  0x3b   : > { %324 = vperm.xlu0 %646, %v318_v0   ;;  %371 = vperm.xlu1 %647, %v560_v2   ;;  %s918_s18 = scalar_select %p303_p4, %s762_s24, 1  ;;  %vm403_vm1 = vcmask 122880  }
  0x3c   : > { %s360_s8 = sshra.s32 %s762_s24, 7  ;;  %s365_s14 = sand.u32 127, %s762_s24 }
  0x3d   : > { %s558_s19 = sshll.u32 %s918_s18, 2  ;;  %s567_s13 = sshll.u32 %s360_s8, 7 }
  0x3e   : > { %s309_s28 = scalar_lea.vmem %s976_s0, %s558_s19  ;;  %s568_s11 = sadd.s32 128, %s567_s13 }
  0x3f   : > { %341 = vperm.xlu0 %646, %v319_v3   ;;  %387 = vperm.xlu1 %647, %v561_v4   ;;  %v317_v5 = vld [vmem:[%s309_s28] sm:$0xf]  ;;  %s366_s15 = sadd.s32 %s568_s11, %s365_s14  ;;  %s321_s16 = sld [smem:[#allocation5]] }
  0x40   : > { %v336_v14 = vstv %s320_s30  ;;  %s367_s12 = sld [smem:[#allocation2 + %s366_s15]]  ;;  %s316_s28 = scalar_lea.vmem %s981_s5, %s558_s19 }
  0x41   : > { %s563_s17 = sld [smem:[#allocation5 + $0x80]]  ;;  %s301_s30 = sand.u32 1, %s754_s22  }
  0x42   : > { %s564_s18 = sshll.u32 %s762_s24, 4  ;;  %s302_s19 = scalar_lea.vmem [#allocation7], %s301_s30 }
  0x43   : > { %s429_s8 = sshll.u32 %s302_s19, 4  ;;  %s427_s14 = scalar_lea.hbm %s982_s6, %s564_s18  ;;  %s430_s8 = int_to_ptr.vmem [resolvable:$true] %s429_s8 }
  0x44   : > { %s413_s15 = scalar_lea.sflag [#allocation3], %s301_s30  ;;  %p994_p10 = scmp.ne.s32.totalorder %s987_s7, 0 }
  0x45   : > { %v348_v34 = vstv %s321_s16  ;;  %s775_s16 = smov [#allocation7]  }
  0x46   : > { %v382_v29 = vstv %s367_s12  ;;  %s686_s12 = scalar_lea.vmem %s430_s8, 16  ;;  %s690_s24 = sshll.u32 %s775_s16, 4  ;;  %s691_s24 = int_to_ptr.vmem [resolvable:$false] %s690_s24 }
  0x47   : > { %v394_v41 = vstv %s563_s17  ;;  %p687_p8 = scmp.ne.s32.totalorder %s430_s8, %s686_s12  ;;  %s692_s17 = scalar_lea.vmem %s691_s24, 32 }
  0x48   : > { %p693_p1 = scmp.lt.s32.totalorder %s430_s8, %s691_s24  ;;  %p694_p6 = scmp.lt.s32.totalorder %s692_s17, %s686_s12 }
  0x49   : > { %p688_p11 = pnand %p687_p8, %p994_p10 }
  0x4a   : > { %p695_p7 = por %p694_p6, %p693_p1 }
  0x4b   : > { %p689_p13 = pneg %p688_p11 }
  0x4d   : > { %p696_p9 = pnand %p695_p7, %p689_p13 }
  0xb6   : > { %v325_v6 = vpop.permute.xlu0 %324  ;;  %v372_v21 = vpop.permute.xlu1 %371 }
  0xb7   : > { %v327_v7 = vmul.f32 %v325_v6, %v317_v5 }
  0xb9   : > { %v329_v8 = vsel %vm328_vm0, %v327_v7, 0.0 }
  0xba   : > { %v330_v9 = vrot.slane %v329_v8, 4  ;;  %v342_v18 = vpop.permute.xlu0 %341  ;;  %v388_v38 = vpop.permute.xlu1 %387 }
  0xbc   : > { %v331_v10 = vadd.f32 %v330_v9, %v329_v8 }
  0xbe   : > { %v332_v11 = vrot.slane %v331_v10, 2 }
  0xc0   : > { %v333_v12 = vadd.f32 %v332_v11, %v331_v10 }
  0xc2   : > { %v334_v13 = vrot.slane %v333_v12, 1 }
  0xc4   : > { %v335_v15 = vadd.f32 %v334_v13, %v333_v12 }
  0xc6   : > { %v337_v16 = vadd.f32 %v336_v14, %v335_v15 }
  0xc8   : > { %648 = vtanh.f32 %v337_v16 }
  0xd5   : > { %v649_v17 = vpop.eup %648 }
  0xd6   : > { %v344_v19 = vmul.f32 %v649_v17, %v342_v18  ;;  %v346_v32 = vmul.f32 %v649_v17, %v649_v17 }
  0xd8   : > { %v345_v20 = vadd.f32 %v344_v19, %v317_v5  ;;  %v347_v33 = vsub.f32 1.0, %v346_v32 }
  0xda   : > { %v374_v22 = vmul.f32 %v372_v21, %v345_v20  ;;  %v349_v35 = vmul.f32 %v348_v34, %v347_v33 }
  0xdc   : > { %v375_v23 = vsel %vm328_vm0, %v374_v22, 0.0  ;;  %v350_v36 = vadd.f32 1.0, %v349_v35 }
  0xdd   : > { %v376_v24 = vrot.slane %v375_v23, 4 }
  0xde   : > { %v351_v43 = vand.u32 2147483647, %v350_v36 }
  0xdf   : > { %v377_v25 = vadd.f32 %v376_v24, %v375_v23 }
  0xe0   : > { %v352_v46 = vadd.f32 0.0001, %v351_v43 }
  0xe1   : > { %v378_v26 = vrot.slane %v377_v25, 2 }
  0xe3   : > { %v379_v27 = vadd.f32 %v378_v26, %v377_v25 }
  0xe5   : > { %v380_v28 = vrot.slane %v379_v27, 1 }
  0xe7   : > { %v381_v30 = vadd.f32 %v380_v28, %v379_v27 }
  0xe9   : > { %v383_v31 = vadd.f32 %v382_v29, %v381_v30 }
  0xeb   : > { %650 = vtanh.f32 %v383_v31 }
  0xec   : > { %652 = vlog2.f32 %v352_v46 }
  0xf8   : > { %v651_v37 = vpop.eup %650 }
  0xf9   : > { %v390_v39 = vmul.f32 %v651_v37, %v388_v38  ;;  %v392_v40 = vmul.f32 %v651_v37, %v651_v37  ;;  %v653_v50 = vpop.eup %652 }
  0xfa   : > { %v354_v52 = vmul.f32 0.6931472, %v653_v50 }
  0xfb   : > { %v391_v42 = vadd.f32 %v390_v39, %v345_v20  ;;  %v393_v44 = vsub.f32 1.0, %v392_v40 }
  0xfd   : > { %402 = vst.msk [vmem:[%s316_s28] sm:$0xf] %vm328_vm0, %v391_v42  ;;  %v395_v45 = vmul.f32 %v394_v41, %v393_v44 }
  0xff   : > { %v396_v47 = vadd.f32 1.0, %v395_v45 }
 0x101   : > { %v397_v48 = vand.u32 2147483647, %v396_v47 }
 0x103   : > { %v398_v49 = vadd.f32 0.0001, %v397_v48 }
 0x105   : > { %654 = vlog2.f32 %v398_v49 }
 0x112   : > { %v655_v51 = vpop.eup %654 }
 0x113   : > { %v400_v53 = vmul.f32 0.6931472, %v655_v51 }
 0x115   : > { %v401_v54 = vadd.f32 %v400_v53, %v354_v52 }
 0x117   : > { %404 = vst.msk [vmem:[%s302_s19] sm:$0x1] %vm403_vm1, %v401_v54 }
 0x118   : > { %699 = shalt.err (!%p696_p9)
}
 0x119   : > { %s700_s20 = scalar_lea.hbm %s427_s14, 16  ;;  %s704_s30 = scalar_lea.hbm %s982_s6, 32 }
 0x11a   : > { %p701_p12 = scmp.ne.s32.totalorder %s427_s14, %s700_s20  ;;  %p705_p3 = scmp.lt.s32.totalorder %s427_s14, %s982_s6 }
 0x11b   : > { %p706_p5 = scmp.lt.s32.totalorder %s704_s30, %s700_s20 }
 0x11c   : > { %p702_p0 = pnand %p701_p12, %p994_p10 }
 0x11d   : > { %p707_p4 = por %p706_p5, %p705_p3 }
 0x11e   : > { %p703_p2 = pneg %p702_p0 }
 0x120   : > { %p708_p8 = pnand %p707_p4, %p703_p2 }
 0x122   : > { %711 = shalt.err (!%p708_p8)
}
 0x123   : > { %577 = dma.vmem_to_hbm [thread:$0]  (%p994_p10), %s430_s8, 16, %s427_s14, %s413_s15  }
 0x124 PF: > { %p594_p11 = scmp.ge.s32.totalorder %s770_s26, 2  ;;  %s451_s13 = sand.u32 1, %s750_s21  }
 0x125   : > { %p995_p13 = scmp.ne.s32.totalorder %s988_s9, 0  ;;  %s452_s11 = scalar_lea.sflag [#allocation3], %s451_s13 }
 0x127   : > { %p587_p1 = pnand %p594_p11, %p995_p13 }
 0x129   : > { %p588_p6 = pneg %p587_p1 }
 0x12b   : > { %745 = dma.done.wait (%p588_p6), %s452_s11, 16  }
 0x12c   : > { %747 = vsyncadd (%p588_p6), %s452_s11, 4294967280  ;;  %s22_s26 = sadd.s32 1, %s770_s26   ;;  %s996_s21 = smov %s754_s22 }
 0x12d   : > { %p19_p7 = scmp.ge.s32.totalorder %s22_s26, 4   ;;  %s997_s22 = smov %s758_s23 }
 0x12e   : > { %s998_s23 = smov %s864_s10  ;;  %s999_s24 = smov %s766_s25 }
 0x12f   : > { %s1000_s25 = smov %s1002_s29  ;;  %21 = sbr.rel (!%p19_p7) target bundleno = 6 (0x6), region = 98 }
 0x134   :  { %456 = vsyncpa [#allocation3], 1 }
 0x135   :  { %458 = vsyncpa [#allocation3 + $0x1], 1 }
 0x136   :  { %459 = vsyncpa [#allocation4], 1 }
 0x137   :  { %461 = vsyncpa [#allocation4 + $0x1], 1 }
 0x138   :  { %462 = vsyncpa [#allocation6], 1 }

</bundles_post_ra>
